<compile_context>
chip_gen: v6e
topology: v6e:2x2x1
jax: 0.10.0
libtpu: 0.0.40
codegen_flags: <defaults>
</compile_context>

<pallas_src>
import functools
import math

import jax
import jax.numpy as jnp
from jax.experimental import pallas as pl
from jax.experimental.pallas import tpu as pltpu


_VMEM_LIMIT_BYTES = 32 * 1024 * 1024   # safe on v5e/v6e (128 MiB phys) and v7x (64 MiB phys)
_TILE_BUDGET_BYTES = 12 * 1024 * 1024  # approximate per-step working-set target
_ROW_CAP = 1024                        # max rows per block


def _row_align(*dtypes):
    """Sublane packing alignment: 8 rows for 32-bit, 16 for 16-bit, 32 for 8-bit."""
    min_bytes = min(jnp.dtype(d).itemsize for d in dtypes)
    return max(8, 32 // max(min_bytes, 1))


def _choose_tile(n_rows, per_row_bytes, align, *, want_split):
    """Pick a row-tile size: as large as the VMEM budget allows, sublane-aligned,
    and (optionally) split into >= 2 grid steps so both v7x TensorCores get work."""
    if n_rows <= align:
        return n_rows  # block == full dim, always legal
    t = max(1, _TILE_BUDGET_BYTES // max(per_row_bytes, 1))
    t = min(t, _ROW_CAP, n_rows)
    t = max(align, (t // align) * align)
    if t >= n_rows:
        if want_split and n_rows >= 2 * align:
            half = (n_rows + 1) // 2
            t = ((half + align - 1) // align) * align
        else:
            t = n_rows
    return t


def _softmax_kernel(x_ref, o_ref):
    x = x_ref[...].astype(jnp.float32)
    mx = jnp.max(x, axis=-1, keepdims=True)
    e = jnp.exp(x - mx)
    s = jnp.sum(e, axis=-1, keepdims=True)
    o_ref[...] = (e * pl.reciprocal(s, approx=True)).astype(o_ref.dtype)


def _softmax_mask_kernel(x_ref, m_ref, o_ref, *, add_in_fp32):
    if add_in_fp32:
        x = x_ref[...].astype(jnp.float32) + m_ref[...].astype(jnp.float32)
    else:
        x = (x_ref[...] + m_ref[...]).astype(jnp.float32)
    mx = jnp.max(x, axis=-1, keepdims=True)
    e = jnp.exp(x - mx)
    s = jnp.sum(e, axis=-1, keepdims=True)
    o_ref[...] = (e * pl.reciprocal(s, approx=True)).astype(o_ref.dtype)


def _to_4d(x, m):
    """Normalize x to rank-4 [B, H, Q, K]; keep mask at its small broadcast shape."""
    nd = x.ndim
    m = m.reshape((1,) * (nd - m.ndim) + m.shape)  # right-align (PyTorch broadcasting)
    if nd < 4:
        pad = 4 - nd
        x = x.reshape((1,) * pad + x.shape)
        m = m.reshape((1,) * pad + m.shape)
    elif nd > 4:
        lead_x = x.shape[: nd - 3]
        lead_m = m.shape[: nd - 3]
        if all(d == 1 for d in lead_m):
            m = m.reshape((1,) + m.shape[nd - 3:])
        else:
            # rare: mixed broadcast in leading dims -> expand only those dims
            m = jnp.broadcast_to(m, tuple(lead_x) + m.shape[nd - 3:])
            m = m.reshape((-1,) + m.shape[nd - 3:])
        x = x.reshape((-1,) + x.shape[nd - 3:])
    return x, m


@functools.partial(jax.jit, static_argnames=("seq_op_in_fp32",))
def torch_softmax(inputs, attention_mask=None, *, seq_op_in_fp32=False):
    """Forward pass of TorchSoftmax as a Pallas TPU kernel."""
    input_dtype = inputs.dtype
    x = inputs
    orig_shape = x.shape
    K = orig_shape[-1]
    # TODO(synk): if K is not a multiple of 128 in real workloads, pad K to the next
    # multiple of 128 at the caller so the output stores stay lane-dense.

    out_item = jnp.dtype(input_dtype).itemsize

    if attention_mask is None:
        rows = math.prod(orig_shape[:-1]) if len(orig_shape) > 1 else 1
        x2 = x.reshape(rows, K)
        align = _row_align(x2.dtype, input_dtype)
        # ~ double-buffered in + out, plus fp32 intermediates, per row
        per_row = K * (2 * x2.dtype.itemsize + 2 * out_item + 12)
        tr = _choose_tile(rows, per_row, align, want_split=True)
        grid = (pl.cdiv(rows, tr),)
        out2 = pl.pallas_call(
            _softmax_kernel,
            out_shape=jax.ShapeDtypeStruct((rows, K), input_dtype),
            grid_spec=pltpu.PrefetchScalarGridSpec(
                num_scalar_prefetch=0,
                grid=grid,
                in_specs=[pl.BlockSpec((tr, K), lambda i: (i, 0))],
                out_specs=pl.BlockSpec((tr, K), lambda i: (i, 0)),
            ),
            compiler_params=pltpu.CompilerParams(
                dimension_semantics=("parallel",),
                vmem_limit_bytes=_VMEM_LIMIT_BYTES,
            ),
        )(x2)
        return out2.reshape(orig_shape)

    # ---- masked path: mask stays small; broadcast resolved via BlockSpec + in-kernel add
    x4, m4 = _to_4d(x, attention_mask)
    B, H, Q, _ = x4.shape
    if m4.shape[-1] != K:
        m4 = jnp.broadcast_to(m4, m4.shape[:-1] + (K,))  # tiny (mask K-dim was 1)
    mB, mH, mQ, _ = m4.shape

    align = _row_align(x4.dtype, m4.dtype, input_dtype)
    mask_bytes_per_row = 2 * K * m4.dtype.itemsize if mQ == Q else 0
    per_row = K * (2 * x4.dtype.itemsize + 2 * out_item + 12) + mask_bytes_per_row
    tq = _choose_tile(Q, per_row, align, want_split=(B * H == 1))
    nq = pl.cdiv(Q, tq)
    m_blk_q = tq if mQ == Q else 1

    def x_map(b, h, q):
        return (b, h, q, 0)

    def m_map(b, h, q):
        return (b if mB > 1 else 0,
                h if mH > 1 else 0,
                q if mQ > 1 else 0,
                0)

    kernel = functools.partial(_softmax_mask_kernel, add_in_fp32=bool(seq_op_in_fp32))
    out4 = pl.pallas_call(
        kernel,
        out_shape=jax.ShapeDtypeStruct((B, H, Q, K), input_dtype),
        grid_spec=pltpu.PrefetchScalarGridSpec(
            num_scalar_prefetch=0,
            grid=(B, H, nq),
            in_specs=[
                pl.BlockSpec((None, None, tq, K), x_map),
                pl.BlockSpec((None, None, m_blk_q, K), m_map),
            ],
            out_specs=pl.BlockSpec((None, None, tq, K), x_map),
        ),
        compiler_params=pltpu.CompilerParams(
            dimension_semantics=("parallel", "parallel", "parallel"),
            vmem_limit_bytes=_VMEM_LIMIT_BYTES,
        ),
    )(x4, m4)
    return out4.reshape(orig_shape)


def _reference(inputs, attention_mask=None, *, seq_op_in_fp32=False):
    input_dtype = inputs.dtype
    x = inputs
    m = attention_mask
    if seq_op_in_fp32:
        x = x.astype(jnp.float32)
        if m is not None:
            m = m.astype(jnp.float32)
    if m is not None:
        x = x + m
    return jax.nn.softmax(x.astype(jnp.float32), axis=-1).astype(input_dtype)


if __name__ == "__main__":
    key = jax.random.PRNGKey(0)
    k1, k2 = jax.random.split(key)

    # attention logits: [B, H, Q, K]
    B, H, Q, K = 2, 4, 8, 128
    logits = jax.random.normal(k1, (B, H, Q, K), dtype=jnp.float32).astype(jnp.bfloat16)
    # additive attention mask, broadcast over heads and query positions: [B, 1, 1, K]
    mask_bool = jax.random.bernoulli(k2, p=0.8, shape=(B, 1, 1, K))
    attn_mask = jnp.where(mask_bool, 0.0, -10000.0).astype(jnp.bfloat16)

    # case 1: with mask, seq_op_in_fp32=True
    out1 = torch_softmax(logits, attn_mask, seq_op_in_fp32=True)
    jax.block_until_ready(out1)
    ref1 = _reference(logits, attn_mask, seq_op_in_fp32=True)
    assert out1.shape == logits.shape and out1.dtype == logits.dtype
    assert jnp.allclose(out1.astype(jnp.float32), ref1.astype(jnp.float32), atol=1e-2)

    # case 2: no mask, seq_op_in_fp32=False
    out2 = torch_softmax(logits, None, seq_op_in_fp32=False)
    jax.block_until_ready(out2)
    ref2 = _reference(logits, None, seq_op_in_fp32=False)
    assert out2.shape == logits.shape and out2.dtype == logits.dtype
    assert jnp.allclose(out2.astype(jnp.float32), ref2.astype(jnp.float32), atol=1e-2)

    # case 3: with mask, seq_op_in_fp32=False (bf16 add path)
    out3 = torch_softmax(logits, attn_mask, seq_op_in_fp32=False)
    jax.block_until_ready(out3)
    ref3 = _reference(logits, attn_mask, seq_op_in_fp32=False)
    assert jnp.allclose(out3.astype(jnp.float32), ref3.astype(jnp.float32), atol=1e-2)

    print("KERNEL_OK")
</pallas_src>

<mosaic_0001>
module attributes {stable_mosaic.version = 11 : i64} {
  func.func @_softmax_mask_kernel(%arg0: i32, %arg1: i32, %arg2: i32, %arg3: memref<1x1x8x128xbf16, #tpu.memory_space<vmem>>, %arg4: memref<1x1x1x128xbf16, #tpu.memory_space<vmem>>, %arg5: memref<1x1x8x128xbf16, #tpu.memory_space<vmem>>) attributes {dimension_semantics = [#tpu.dimension_semantics<parallel>, #tpu.dimension_semantics<parallel>, #tpu.dimension_semantics<parallel>], iteration_bounds = array<i64: 2, 4, 1>, scalar_prefetch = 0 : i64, scratch_operands = 0 : i64, tpu.core_type = #tpu.core_type<tc>, window_params = [{transform_indices = @transform_0, window_bounds = array<i64: 1, 1, 8, 128>}, {transform_indices = @transform_1, window_bounds = array<i64: 1, 1, 1, 128>}, {transform_indices = @transform_2, window_bounds = array<i64: 1, 1, 8, 128>}]} {
    %c0 = arith.constant 0 : index
    %c0_0 = arith.constant 0 : index
    %c0_1 = arith.constant 0 : index
    %c0_2 = arith.constant 0 : index
    %0 = vector.load %arg3[%c0, %c0_0, %c0_1, %c0_2] : memref<1x1x8x128xbf16, #tpu.memory_space<vmem>>, vector<1x1x8x128xbf16>
    %1 = vector.shape_cast %0 : vector<1x1x8x128xbf16> to vector<8x128xbf16>
    %2 = arith.extf %1 : vector<8x128xbf16> to vector<8x128xf32>
    %c0_3 = arith.constant 0 : index
    %c0_4 = arith.constant 0 : index
    %c0_5 = arith.constant 0 : index
    %c0_6 = arith.constant 0 : index
    %3 = vector.load %arg4[%c0_3, %c0_4, %c0_5, %c0_6] : memref<1x1x1x128xbf16, #tpu.memory_space<vmem>>, vector<1x1x1x128xbf16>
    %4 = vector.shape_cast %3 : vector<1x1x1x128xbf16> to vector<1x128xbf16>
    %5 = arith.extf %4 : vector<1x128xbf16> to vector<1x128xf32>
    %6 = vector.broadcast %5 : vector<1x128xf32> to vector<8x128xf32>
    %7 = arith.addf %2, %6 : vector<8x128xf32>
    %cst = arith.constant dense<0xFF800000> : vector<8xf32>
    %8 = vector.multi_reduction <maximumf>, %7, %cst [1] : vector<8x128xf32> to vector<8xf32>
    %9 = vector.shape_cast %8 : vector<8xf32> to vector<8x1xf32>
    %10 = vector.broadcast %9 : vector<8x1xf32> to vector<8x128xf32>
    %11 = arith.subf %7, %10 : vector<8x128xf32>
    %12 = math.exp %11 : vector<8x128xf32>
    %cst_7 = arith.constant dense<0.000000e+00> : vector<8xf32>
    %13 = vector.multi_reduction <add>, %12, %cst_7 [1] : vector<8x128xf32> to vector<8xf32>
    %14 = vector.shape_cast %13 : vector<8xf32> to vector<8x1xf32>
    %15 = tpu.reciprocal %14 {approx = true} : vector<8x1xf32> -> vector<8x1xf32>
    %16 = vector.broadcast %15 : vector<8x1xf32> to vector<8x128xf32>
    %17 = arith.mulf %12, %16 : vector<8x128xf32>
    %18 = arith.truncf %17 : vector<8x128xf32> to vector<8x128xbf16>
    %c0_8 = arith.constant 0 : index
    %c0_9 = arith.constant 0 : index
    %c0_10 = arith.constant 0 : index
    %c0_11 = arith.constant 0 : index
    %19 = vector.load %arg5[%c0_8, %c0_9, %c0_10, %c0_11] : memref<1x1x8x128xbf16, #tpu.memory_space<vmem>>, vector<1x1x8x128xbf16>
    %20 = vector.shape_cast %19 : vector<1x1x8x128xbf16> to vector<8x128xbf16>
    %21 = vector.shape_cast %18 : vector<8x128xbf16> to vector<1x1x8x128xbf16>
    tpu.vector_store %arg5[%c0_8, %c0_9, %c0_10, %c0_11], %21 {strides = array<i32>} : memref<1x1x8x128xbf16, #tpu.memory_space<vmem>>, vector<1x1x8x128xbf16>,
    return
  }
  func.func @transform_0(%arg0: i32, %arg1: i32, %arg2: i32) -> (i32, i32, i32, i32) {
    %c0_i32 = arith.constant 0 : i32
    %c0_i32_0 = arith.constant 0 : i32
    return %arg0, %arg1, %arg2, %c0_i32 : i32, i32, i32, i32
  }
  func.func @transform_1(%arg0: i32, %arg1: i32, %arg2: i32) -> (i32, i32, i32, i32) {
    %c0_i32 = arith.constant 0 : i32
    %c0_i32_0 = arith.constant 0 : i32
    %c0_i32_1 = arith.constant 0 : i32
    %c0_i32_2 = arith.constant 0 : i32
    return %arg0, %c0_i32, %c0_i32_0, %c0_i32_1 : i32, i32, i32, i32
  }
  func.func @transform_2(%arg0: i32, %arg1: i32, %arg2: i32) -> (i32, i32, i32, i32) {
    %c0_i32 = arith.constant 0 : i32
    %c0_i32_0 = arith.constant 0 : i32
    return %arg0, %arg1, %arg2, %c0_i32 : i32, i32, i32, i32
  }
}

</mosaic_0001>

<bundles_post_ra>
// kernel: torch_softmax.1
= control target key start
LH: loop header
LB: loop body
LE: loop exit
PB: predicated region body
PF: predicated region fallthrough
CT: control target
= control target key end

     0   :  { %7 = vsyncpa [#allocation3], 0  ;;  %s744_s0 = inlined_call_operand.hbm [shape: bf16[2,4,8,128], index: 0, kind: input, shape index: {}]   ;;  %s745_s1 = inlined_call_operand.vmem [shape: bf16[2,1,1,128], index: 1, kind: input, shape index: {}]   ;;  %s746_s2 = inlined_call_operand.hbm [shape: bf16[2,4,8,128], index: 2, kind: output, shape index: {}]  }
   0x1   :  { %9 = vsyncpa [#allocation3 + $0x1], 0 }
   0x2   :  { %10 = vsyncpa [#allocation4], 0 }
   0x3   :  { %12 = vsyncpa [#allocation4 + $0x1], 0  ;;  %s579_s9 = smov 0   ;;  %s581_s10 = smov 0  }
   0x4   :  { %s583_s11 = smov 0   ;;  %s585_s12 = smov 0  }
   0x5   :  { %s587_s13 = smov 0   ;;  %s589_s14 = smov 0  }
   0x6   :  { %s591_s15 = smov 0   ;;  %s593_s16 = smov 0  }
   0x7 LB: > { %s339_s17 = sadd.s32 4294967295, %s560_s16   ;;  %s340_s18 = sadd.s32 4294967294, %s560_s16   ;;  %s560_s16 = sphi %s593_s16, %s18_s16   ;;  %s556_s15 = sphi %s591_s15, %s759_s15   ;;  %s552_s14 = sphi %s589_s14, %s758_s14   ;;  %s548_s13 = sphi %s587_s13, %s757_s13   ;;  %s544_s12 = sphi %s585_s12, %s756_s12   ;;  %s540_s11 = sphi %s583_s11, %s755_s11   ;;  %s536_s10 = sphi %s581_s10, %s754_s10   ;;  %s532_s9 = sphi %s579_s9, %s753_s9  }
   0x8   : > { %s33_s19 = sadd.s32 1, %s552_s14  ;;  %s37_s20 = sadd.s32 1, %s556_s15 }
   0x9   : > { %p35_p0 = scmp.ge.s32.totalorder %s33_s19, 4  ;;  %s48_s21 = sadd.s32 1, %s540_s11 }
   0xa   : > { %p55_p1 = scmp.ne.s32.totalorder %s540_s11, %s536_s10  ;;  %p56_p2 = scmp.eq.s32.totalorder %s560_s16, 0 }
   0xb   : > { %s761_s19 = smov (%p35_p0, %s33_s19), 0  ;;  %s763_s20 = smov (!%p35_p0, %s37_s20), %s556_s15 }
   0xc   : > { %s42_s22 = ssub.s32 %s552_s14, %s761_s19  ;;  %p632_p3 = por %p56_p2, %p55_p1 }
   0xd   : > { %p39_p4 = scmp.ge.s32.totalorder %s763_s20, 2  ;;  %p61_p5 = scmp.ne.s32.totalorder %s536_s10, %s532_s9 }
   0xe   : > { %p62_p6 = scmp.eq.s32.totalorder %s339_s17, 0  ;;  %p115_p7 = scmp.eq.s32.totalorder %s339_s17, 7 }
   0xf   : > { %s765_s20 = smov (%p39_p4, %s763_s20), 0  ;;  %p121_p10 = scmp.eq.s32.totalorder %s340_s18, 7 }
  0x10   : > { %p640_p8 = por %p62_p6, %p61_p5  ;;  %p644_p9 = por %p115_p7, %p55_p1 }
  0x11   : > { %s41_s26 = ssub.s32 %s556_s15, %s765_s20  ;;  %p650_p12 = por %p121_p10, %p61_p5 }
  0x12   : > { %s43_s27 = sor.u32 %s42_s22, %s41_s26  ;;  %p366_p13 = scmp.lt.s32.totalorder %s560_s16, 8 }
  0x13   : > { %p46_p11 = scmp.eq.s32.totalorder %s43_s27, 0  ;;  %s141_s29 = sand.u32 1, %s540_s11  }
  0x14   : > { %s750_s28 = scalar_select %p650_p12, 1, 0 }
  0x15   : > { %s657_s30 = scalar_select %p46_p11, %s540_s11, %s48_s21  }
  0x16   : > { %s343_s3 = sshll.u32 %s141_s29, 2  ;;  %s344_s4 = sshll.u32 %s556_s15, 2 }
  0x17   : > { %s151_s5 = sadd.s32 %s552_s14, %s344_s4  ;;  %s145_s6 = scalar_lea.vmem [#allocation2], %s343_s3 }
  0x18   : > { %s155_s7 = sshll.u32 %s145_s6, 4  ;;  %s345_s8 = sshll.u32 %s151_s5, 6  ;;  %s156_s7 = int_to_ptr.vmem [resolvable:$true] %s155_s7 }
  0x19   : > { %s153_s22 = scalar_lea.hbm %s744_s0, %s345_s8  ;;  %p666_p0 = pnand %p366_p13, %p632_p3 }
  0x1a   : > { %p346_p1 = scmp.ge.s32.totalorder %s560_s16, 1  ;;  %p166_p2 = scmp.lt.s32.totalorder %s560_s16, 9 }
  0x1b   : > { %s142_s21 = scalar_lea.sflag [#allocation3], %s141_s29  ;;  %p438_p4 = pneg %p666_p0 }
  0x1c   : > { %s449_s27 = scalar_lea.vmem %s156_s7, 64  ;;  %s562_s3 = smov [#allocation2]  }
  0x1d   : > { %p450_p5 = scmp.ne.s32.totalorder %s156_s7, %s449_s27  ;;  %s454_s4 = sshll.u32 %s562_s3, 4  ;;  %s455_s4 = int_to_ptr.vmem [resolvable:$false] %s454_s4 }
  0x1e   : > { %s456_s5 = scalar_lea.vmem %s455_s4, 128  ;;  %p457_p10 = scmp.lt.s32.totalorder %s156_s7, %s455_s4 }
  0x1f   : > { %p452_p6 = pnand %p450_p5, %p438_p4  ;;  %p458_p11 = scmp.lt.s32.totalorder %s456_s5, %s449_s27 }
  0x21   : > { %p453_p7 = pneg %p452_p6  ;;  %p459_p3 = por %p458_p11, %p457_p10 }
  0x23   : > { %p460_p13 = pnand %p459_p3, %p453_p7 }
  0x25   : > { %463 = shalt.err (!%p460_p13)
}
  0x26   : > { %361 = dma.hbm_to_vmem [thread:$0]  (!%p666_p0), %s153_s22, 64, %s156_s7, %s142_s21  }
  0x27   : > { %p167_p12 = pnand %p346_p1, %p166_p2 }
  0x28   : > { %s681_s23 = sand.u32 (!%p167_p12), 1, %s536_s10  }
  0x29   : > { %170 = sbr.rel (%p167_p12) target bundleno = 384 (0x180), region = 28  ;;  %s347_s29 = sshll.u32 (!%p167_p12), %s681_s23, 2 }
  0x2a   : > { %s173_s6 = scalar_lea.sflag (!%p167_p12), [#allocation3], %s681_s23  ;;  %s176_s8 = scalar_lea.vmem (!%p167_p12), [#allocation2], %s347_s29 }
  0x2e   : > { %523 = dma.done.wait (%p640_p8), %s173_s6, 64  }
  0x2f   : > { %525 = vsyncadd (%p640_p8), %s173_s6, 4294967232  ;;  %p200_p0 = scmp.lt.s32.totalorder %s548_s13, 1  ;;  %v207_v0 = vlaneseq  ;;  %v203_v3 = vld [vmem:[%s176_s8] sm:$0xf]  ;;  %s350_s24 = sshll.u32 %s548_s13, 2 }
  0x30   : > { %v204_v5 = vunpack.c.l.bf16 %v203_v3  ;;  %s236_s26 = sadd.s32 %s544_s12, %s350_s24  ;;  %s199_s27 = scalar_lea.vmem [#allocation5], %s347_s29 }
  0x31   : > { %s201_s7 = scalar_select %p200_p0, %s548_s13, 1  ;;  %v208_v1 = vshrl.u32 %v207_v0, 7 }
  0x32   : > { %s351_s21 = sshll.u32 %s236_s26, 6  ;;  %s240_s3 = sshll.u32 %s199_s27, 4  ;;  %s241_s3 = int_to_ptr.vmem [resolvable:$true] %s240_s3 }
  0x33   : > { %s202_s22 = scalar_lea.vmem %s745_s1, %s201_s7  ;;  %v209_v2 = vsub.s32 0, %v208_v1  ;;  %s238_s6 = scalar_lea.hbm %s746_s2, %s351_s21 }
  0x34   : > { %v205_v4 = vld [vmem:[%s202_s22] sm:$0x1]  ;;  %s224_s8 = scalar_lea.sflag [#allocation4], %s681_s23  ;;  %s464_s7 = scalar_lea.vmem %s241_s3, 64 }
  0x35   : > { %v206_v6 = vunpack.c.l.bf16 %v205_v4  ;;  %p465_p8 = scmp.ne.s32.totalorder %s241_s3, %s464_s7  ;;  %s563_s12 = smov [#allocation5]  }
  0x36   : > { %s468_s13 = sshll.u32 %s563_s12, 4  ;;  %s469_s13 = int_to_ptr.vmem [resolvable:$false] %s468_s13 }
  0x37   : > { %v210_v7 = vrot.slane %v206_v6, %v209_v2  ;;  %p466_p12 = pnand %p465_p8, %p644_p9  ;;  %s470_s17 = scalar_lea.vmem %s469_s13, 128 }
  0x38   : > { %p471_p2 = scmp.lt.s32.totalorder %s241_s3, %s469_s13  ;;  %p472_p4 = scmp.lt.s32.totalorder %s470_s17, %s464_s7 }
  0x39   : > { %v211_v8 = vadd.f32 %v210_v7, %v204_v5  ;;  %p467_p1 = pneg %p466_p12 }
  0x3a   : > { %p473_p5 = por %p472_p4, %p471_p2 }
  0x3b   : > { %212 = vmax.xlane.f32.xlu0 %v211_v8 }
  0x3c   : > { %p474_p6 = pnand %p473_p5, %p467_p1 }
  0xc4   : > { %v213_v9 = vpop.xlane.xlu0 %212 }
  0xc5   : > { %v214_v10 = vsub.f32 %v211_v8, %v213_v9 }
  0xc7   : > { %v215_v11 = vmul.f32 1.442695, %v214_v10 }
  0xc9   : > { %432 = vpow2.f32 %v215_v11 }
  0xd6   : > { %v433_v12 = vpop.eup %432 }
  0xd7   : > { %217 = vadd.xlane.f32.xlu0 %v433_v12 }
 0x160   : > { %v218_v13 = vpop.xlane.xlu0 %217 }
 0x161   : > { %434 = vrcp.f32 %v218_v13 }
 0x16e   : > { %v435_v14 = vpop.eup %434 }
 0x16f   : > { %v220_v15 = vmul.f32 %v435_v14, %v433_v12 }
 0x171   : > { %v221_v16 = vpack.c.bf16 %v220_v15, %v220_v15 }
 0x173   : > { %222 = vst [vmem:[%s199_s27] sm:$0xf] %v221_v16 }
 0x174   : > { %477 = shalt.err (!%p474_p6)
}
 0x175   : > { %s478_s29 = scalar_lea.hbm %s238_s6, 64  ;;  %s482_s22 = scalar_lea.hbm %s746_s2, 512 }
 0x176   : > { %p479_p7 = scmp.ne.s32.totalorder %s238_s6, %s478_s29  ;;  %p483_p3 = scmp.lt.s32.totalorder %s238_s6, %s746_s2 }
 0x177   : > { %p484_p13 = scmp.lt.s32.totalorder %s482_s22, %s478_s29 }
 0x178   : > { %p480_p10 = pnand %p479_p7, %p644_p9 }
 0x179   : > { %p485_p0 = por %p484_p13, %p483_p3 }
 0x17a   : > { %p481_p11 = pneg %p480_p10 }
 0x17c   : > { %p486_p8 = pnand %p485_p0, %p481_p11 }
 0x17e   : > { %489 = shalt.err (!%p486_p8)
}
 0x17f   : > { %356 = dma.vmem_to_hbm [thread:$0]  (%p644_p9), %s241_s3, 64, %s238_s6, %s224_s8  }
 0x180 PF: > { %p367_p12 = scmp.ge.s32.totalorder %s560_s16, 2  ;;  %s252_s21 = sand.u32 1, %s532_s9  }
 0x181   : > { %p752_p1 = scmp.ne.s32.totalorder %s750_s28, 0  ;;  %s253_s27 = scalar_lea.sflag [#allocation4], %s252_s21 }
 0x183   : > { %p363_p2 = pnand %p367_p12, %p752_p1 }
 0x185   : > { %p364_p4 = pneg %p363_p2 }
 0x187   : > { %527 = dma.done.wait (%p364_p4), %s253_s27, 64  }
 0x188   : > { %529 = vsyncadd (%p364_p4), %s253_s27, 4294967232  ;;  %s18_s16 = sadd.s32 1, %s560_s16   ;;  %s753_s9 = smov %s536_s10 }
 0x189   : > { %p15_p5 = scmp.ge.s32.totalorder %s18_s16, 10   ;;  %s754_s10 = smov %s540_s11 }
 0x18a   : > { %s755_s11 = smov %s657_s30  ;;  %s756_s12 = smov %s552_s14 }
 0x18b   : > { %s757_s13 = smov %s556_s15  ;;  %s758_s14 = smov %s761_s19 }
 0x18c   : > { %s759_s15 = smov %s765_s20  ;;  %17 = sbr.rel (!%p15_p5) target bundleno = 7 (0x7), region = 76 }
 0x191   :  { %258 = vsyncpa [#allocation3], 1 }
 0x192   :  { %260 = vsyncpa [#allocation3 + $0x1], 1 }
 0x193   :  { %261 = vsyncpa [#allocation4], 1 }
 0x194   :  { %263 = vsyncpa [#allocation4 + $0x1], 1 }

</bundles_post_ra>
